<compile_context>
chip_gen: v6e
topology: v6e:2x2x1
jax: 0.10.0
libtpu: 0.0.40
codegen_flags: <defaults>
</compile_context>

<pallas_src>
import numpy as np
import jax
import jax.numpy as jnp
from jax.experimental import pallas as pl
from jax.experimental.pallas import tpu as pltpu


# -------------------------------------------------------------------------
# Deterministic parameter construction (mirrors STFT.__init__, no file I/O)
# -------------------------------------------------------------------------
def _hann_periodic(n):
    # scipy.signal.get_window('hann', n, fftbins=True)
    m = np.arange(n)
    return 0.5 - 0.5 * np.cos(2.0 * np.pi * m / n)


def _pad_center(v, size):
    pad = size - len(v)
    return np.pad(v, (pad // 2, pad - pad // 2))


def make_stft_params(filter_length, hop_length, win_length, window="hann"):
    scale = filter_length / hop_length
    fourier_basis = np.fft.fft(np.eye(filter_length))
    cutoff = filter_length // 2 + 1
    fourier_basis = np.vstack(
        [np.real(fourier_basis[:cutoff, :]), np.imag(fourier_basis[:cutoff, :])]
    )  # (2C, F)
    forward_basis = fourier_basis.astype(np.float32)                            # (2C, F)
    inverse_basis = np.linalg.pinv(scale * fourier_basis).T.astype(np.float32)  # (2C, F)
    if window is not None:
        assert filter_length >= win_length
        fft_window = _pad_center(_hann_periodic(win_length), filter_length).astype(np.float32)
        forward_basis = forward_basis * fft_window[None, :]
        inverse_basis = inverse_basis * fft_window[None, :]
    return forward_basis, inverse_basis, cutoff


def window_sumsquare_np(n_frames, hop_length, win_length, n_fft):
    n = n_fft + hop_length * (n_frames - 1)
    x = np.zeros(n, dtype=np.float32)
    win_sq = _hann_periodic(win_length).astype(np.float32) ** 2  # norm=None
    win_sq = _pad_center(win_sq, n_fft)
    for i in range(n_frames):
        sample = i * hop_length
        x[sample:min(n, sample + n_fft)] += win_sq[:max(0, min(n_fft, n - sample))]
    return x


# -------------------------------------------------------------------------
# Pallas kernels
# -------------------------------------------------------------------------
def transform_kernel(xT_ref, basis_ref, ri_ref):
    """conv1d(stride=hop) as r = F/hop shifted matmuls; time axis on lanes.

    xT_ref:    (1, hop, n_chunks)    xT[k, m] = xpad[m*hop + k]  (folded audio)
    basis_ref: (2C, F)               fused [real; imag] forward basis
    ri_ref:    (1, 2C, n_frames)     [real; imag] transform, lanes = frames
    """
    hop = xT_ref.shape[1]
    F = basis_ref.shape[1]
    n_frames = ri_ref.shape[2]
    r = F // hop

    # ri[c, t] = sum_j basis[:, j*hop:(j+1)*hop] @ xT[:, j:j+n_frames]
    acc = jnp.dot(basis_ref[:, 0:hop], xT_ref[0, :, 0:n_frames],
                  preferred_element_type=jnp.float32)
    for j in range(1, r):
        acc = acc + jnp.dot(basis_ref[:, j * hop:(j + 1) * hop],
                            xT_ref[0, :, j:j + n_frames],
                            preferred_element_type=jnp.float32)
    ri_ref[0, :, :] = acc


def inverse_kernel(ri_ref, ibt_ref, corr_ref, out_ref):
    """conv_transpose1d(stride=hop) as one fused matmul + vectorized overlap-add.

    ri_ref:   (1, 2C, n_frames)      recombined [real; imag] (= mag*cos | mag*sin)
    ibt_ref:  (F, 2C)                inverse basis, transposed
    corr_ref: (1, hop, n_chunks_out) (F/hop)/window_sumsquare, folded layout
    out_ref:  (1, hop, n_chunks_out) out[k, m] = reconstruction[m*hop + k]
    """
    F = ibt_ref.shape[0]
    hop = out_ref.shape[1]
    n_frames = ri_ref.shape[2]
    r = F // hop

    # frT[f, t] = sum_c inverse_basis[c, f] * ri[c, t]   -> (F, n_frames), lane-dense
    frT = jnp.dot(ibt_ref[...], ri_ref[0], preferred_element_type=jnp.float32)

    # vectorized overlap-add: r shifted full-width adds (instead of per-frame RMW)
    out_ref[...] = jnp.zeros(out_ref.shape, out_ref.dtype)
    for j in range(r):
        cur = out_ref[0, :, j:j + n_frames]
        out_ref[0, :, j:j + n_frames] = cur + frT[j * hop:(j + 1) * hop, :]

    out_ref[...] = out_ref[...] * corr_ref[...]


# -------------------------------------------------------------------------
# Module wrapper
# -------------------------------------------------------------------------
class STFTPallas:
    def __init__(self, filter_length=16, hop_length=4, win_length=16, window="hann"):
        assert filter_length % hop_length == 0, "kernel assumes hop | filter_length"
        self.filter_length = filter_length
        self.hop_length = hop_length
        self.win_length = win_length
        self.window = window
        fb, ib, cutoff = make_stft_params(filter_length, hop_length, win_length, window)
        self.cutoff = cutoff
        self.forward_basis_np = fb            # (2C, F), for the reference check
        self.inverse_basis_np = ib            # (2C, F)
        self.basis = jnp.asarray(fb)          # (2C, F) fused real|imag forward basis
        self.IBt = jnp.asarray(ib.T)          # (F, 2C) transposed inverse basis

    # ---- forward conv as Pallas matmul: returns (B, 2C, n_frames) real|imag ----
    def _transform_ri(self, x):
        B, S = x.shape
        F, hop, C = self.filter_length, self.hop_length, self.cutoff
        assert S % hop == 0  # TODO(synk): general S needs a ragged last chunk
        xpad = jnp.pad(x, ((0, 0), (F // 2, F // 2)), mode="reflect")  # (B, S+F)
        n_chunks = (S + F) // hop
        n_frames = S // hop + 1
        # Fold time: xT[b, k, m] = xpad[b, m*hop + k]. Pure reshape+transpose glue —
        # no F/hop x duplicated frame matrix is ever written to HBM.
        xT = jnp.transpose(xpad.reshape(B, n_chunks, hop), (0, 2, 1))  # (B, hop, n_chunks)

        ri = pl.pallas_call(
            transform_kernel,
            out_shape=jax.ShapeDtypeStruct((B, 2 * C, n_frames), jnp.float32),
            grid=(B,),
            in_specs=[
                pl.BlockSpec((1, hop, n_chunks), lambda b: (b, 0, 0)),
                pl.BlockSpec((2 * C, F), lambda b: (0, 0)),
            ],
            out_specs=pl.BlockSpec((1, 2 * C, n_frames), lambda b: (b, 0, 0)),
            compiler_params=pltpu.CompilerParams(dimension_semantics=("parallel",)),
        )(xT, self.basis)
        return ri

    # ---- inverse conv + overlap-add + window correction (Pallas) ----
    def _inverse_from_ri(self, ri):
        B, two_c, n_frames = ri.shape
        F, hop = self.filter_length, self.hop_length
        r = F // hop
        n_chunks_out = n_frames + r - 1
        L = hop * n_chunks_out                      # = F + hop*(n_frames-1)

        wsum = window_sumsquare_np(n_frames, hop, self.win_length, F)
        tiny = np.finfo(np.float32).tiny
        scale = float(F) / hop
        corr_np = np.where(wsum > tiny, scale / np.maximum(wsum, tiny), scale).astype(np.float32)
        corrT = jnp.asarray(corr_np.reshape(n_chunks_out, hop).T)[None]  # (1, hop, n_chunks_out)

        outT = pl.pallas_call(
            inverse_kernel,
            out_shape=jax.ShapeDtypeStruct((B, hop, n_chunks_out), jnp.float32),
            grid=(B,),
            in_specs=[
                pl.BlockSpec((1, two_c, n_frames), lambda b: (b, 0, 0)),
                pl.BlockSpec((F, two_c), lambda b: (0, 0)),
                pl.BlockSpec((1, hop, n_chunks_out), lambda b: (0, 0, 0)),
            ],
            out_specs=pl.BlockSpec((1, hop, n_chunks_out), lambda b: (b, 0, 0)),
            compiler_params=pltpu.CompilerParams(dimension_semantics=("parallel",)),
        )(ri, self.IBt, corrT)

        # unfold (hop, n_chunks_out) -> time and trim F/2 on both ends (glue)
        out = jnp.transpose(outT, (0, 2, 1)).reshape(B, L)
        out = out[:, F // 2: L - F // 2]
        return out[:, None, :]                      # (B, 1, num_samples) — PyTorch NCW

    # ---- public API (matches PyTorch STFT.transform / .inverse) ----
    def transform(self, x):
        ri = self._transform_ri(x)
        C = self.cutoff
        real, imag = ri[:, :C, :], ri[:, C:, :]
        magnitude = jnp.sqrt(real * real + imag * imag)      # (B, C, n_frames)
        # TODO(synk): atan2 kept in plain JAX glue (Mosaic transcendental coverage).
        phase = jnp.arctan2(imag, real)
        return magnitude, phase

    def inverse(self, magnitude, phase):
        # TODO(synk): cos/sin kept in JAX glue; the recombined tensor is already in
        # the lane-dense (B, 2C, n_frames) layout the kernel consumes.
        ri = jnp.concatenate(
            [magnitude * jnp.cos(phase), magnitude * jnp.sin(phase)], axis=1)
        return self._inverse_from_ri(ri)

    def forward(self, x):
        # Fused path: mag*cos(phase) == real, mag*sin(phase) == imag, so feed the
        # transform's real|imag output straight into the inverse — no atan2/cos/sin
        # round trip and no extra (B, C, n_frames) HBM traffic between the calls.
        return self._inverse_from_ri(self._transform_ri(x))


# -------------------------------------------------------------------------
# Pure-numpy reference (same parameters, same math) for validation
# -------------------------------------------------------------------------
def reference_forward_np(x, fb, ib, filter_length, hop_length, win_length, cutoff):
    x = np.asarray(x, np.float32)
    B, S = x.shape
    F, hop, C = filter_length, hop_length, cutoff
    xpad = np.pad(x, ((0, 0), (F // 2, F // 2)), mode="reflect")
    n_frames = S // hop + 1
    frames = np.stack([xpad[:, t * hop:t * hop + F] for t in range(n_frames)], axis=1)
    ft = np.einsum("btf,cf->bct", frames, fb)                       # (B, 2C, n_frames)
    real, imag = ft[:, :C], ft[:, C:]
    mag = np.sqrt(real ** 2 + imag ** 2)
    phase = np.arctan2(imag, real)
    rc = np.concatenate([mag * np.cos(phase), mag * np.sin(phase)], axis=1)
    L = F + hop * (n_frames - 1)
    inv = np.zeros((B, L), np.float32)
    for t in range(n_frames):
        inv[:, t * hop:t * hop + F] += rc[:, :, t] @ ib
    wsum = window_sumsquare_np(n_frames, hop, win_length, F)
    tiny = np.finfo(np.float32).tiny
    nz = wsum > tiny
    inv[:, nz] /= wsum[nz]
    inv *= float(F) / hop
    inv = inv[:, F // 2: L - F // 2]
    return inv[:, None, :]


# -------------------------------------------------------------------------
if __name__ == "__main__":
    B, S = 2, 64
    stft = STFTPallas(filter_length=16, hop_length=4, win_length=16, window="hann")

    key = jax.random.PRNGKey(0)
    x = jax.random.normal(key, (B, S), dtype=jnp.float32)

    # fused forward path
    recon = stft.forward(x)
    recon = jax.block_until_ready(recon)
    assert recon.shape == (B, 1, S), recon.shape
    assert recon.dtype == jnp.float32

    ref = reference_forward_np(
        np.asarray(x), stft.forward_basis_np, stft.inverse_basis_np,
        stft.filter_length, stft.hop_length, stft.win_length, stft.cutoff,
    )
    np.testing.assert_allclose(np.asarray(recon), ref, rtol=1e-2, atol=1e-2)

    # public mag/phase API path (exercises the cos/sin recombine glue too)
    mag, phase = stft.transform(x)
    assert mag.shape == (B, stft.cutoff, S // stft.hop_length + 1), mag.shape
    recon2 = jax.block_until_ready(stft.inverse(mag, phase))
    np.testing.assert_allclose(np.asarray(recon2), ref, rtol=1e-2, atol=1e-2)

    print("KERNEL_OK")
</pallas_src>

<mosaic_0001>
module attributes {stable_mosaic.version = 11 : i64} {
  func.func @transform_kernel(%arg0: i32, %arg1: memref<1x4x20xf32, #tpu.memory_space<vmem>>, %arg2: memref<18x16xf32, #tpu.memory_space<vmem>>, %arg3: memref<1x18x17xf32, #tpu.memory_space<vmem>>) attributes {dimension_semantics = [#tpu.dimension_semantics<parallel>], iteration_bounds = array<i64: 2>, scalar_prefetch = 0 : i64, scratch_operands = 0 : i64, tpu.core_type = #tpu.core_type<tc>, window_params = [{transform_indices = @transform_0, window_bounds = array<i64: 1, 4, 20>}, {pipeline_mode = #tpu.pipeline_mode<synchronous>, transform_indices = @transform_1, window_bounds = array<i64: 18, 16>}, {transform_indices = @transform_2, window_bounds = array<i64: 1, 18, 17>}]} {
    %c0 = arith.constant 0 : index
    %c0_0 = arith.constant 0 : index
    %0 = vector.load %arg2[%c0, %c0_0] : memref<18x16xf32, #tpu.memory_space<vmem>>, vector<18x4xf32>
    %c0_1 = arith.constant 0 : index
    %c0_2 = arith.constant 0 : index
    %c0_3 = arith.constant 0 : index
    %1 = vector.load %arg1[%c0_1, %c0_2, %c0_3] : memref<1x4x20xf32, #tpu.memory_space<vmem>>, vector<1x4x17xf32>
    %2 = vector.shape_cast %1 : vector<1x4x17xf32> to vector<4x17xf32>
    %cst = arith.constant dense<0.000000e+00> : vector<18x17xf32>
    %3 = tpu.matmul %0, %2, %cst {dimension_numbers = #tpu.dot_dimension_numbers<[1], [0], [0], [1], [0, 0, 1, 1], [], []>} : vector<18x4xf32>, vector<4x17xf32>, vector<18x17xf32> -> vector<18x17xf32>
    %c0_4 = arith.constant 0 : index
    %c4 = arith.constant 4 : index
    %4 = vector.load %arg2[%c0_4, %c4] : memref<18x16xf32, #tpu.memory_space<vmem>>, vector<18x4xf32>
    %c0_5 = arith.constant 0 : index
    %c0_6 = arith.constant 0 : index
    %c1 = arith.constant 1 : index
    %5 = vector.load %arg1[%c0_5, %c0_6, %c1] : memref<1x4x20xf32, #tpu.memory_space<vmem>>, vector<1x4x17xf32>
    %6 = vector.shape_cast %5 : vector<1x4x17xf32> to vector<4x17xf32>
    %cst_7 = arith.constant dense<0.000000e+00> : vector<18x17xf32>
    %7 = tpu.matmul %4, %6, %cst_7 {dimension_numbers = #tpu.dot_dimension_numbers<[1], [0], [0], [1], [0, 0, 1, 1], [], []>} : vector<18x4xf32>, vector<4x17xf32>, vector<18x17xf32> -> vector<18x17xf32>
    %8 = arith.addf %3, %7 : vector<18x17xf32>
    %c0_8 = arith.constant 0 : index
    %c8 = arith.constant 8 : index
    %9 = vector.load %arg2[%c0_8, %c8] : memref<18x16xf32, #tpu.memory_space<vmem>>, vector<18x4xf32>
    %c0_9 = arith.constant 0 : index
    %c0_10 = arith.constant 0 : index
    %c2 = arith.constant 2 : index
    %10 = vector.load %arg1[%c0_9, %c0_10, %c2] : memref<1x4x20xf32, #tpu.memory_space<vmem>>, vector<1x4x17xf32>
    %11 = vector.shape_cast %10 : vector<1x4x17xf32> to vector<4x17xf32>
    %cst_11 = arith.constant dense<0.000000e+00> : vector<18x17xf32>
    %12 = tpu.matmul %9, %11, %cst_11 {dimension_numbers = #tpu.dot_dimension_numbers<[1], [0], [0], [1], [0, 0, 1, 1], [], []>} : vector<18x4xf32>, vector<4x17xf32>, vector<18x17xf32> -> vector<18x17xf32>
    %13 = arith.addf %8, %12 : vector<18x17xf32>
    %c0_12 = arith.constant 0 : index
    %c12 = arith.constant 12 : index
    %14 = vector.load %arg2[%c0_12, %c12] : memref<18x16xf32, #tpu.memory_space<vmem>>, vector<18x4xf32>
    %c0_13 = arith.constant 0 : index
    %c0_14 = arith.constant 0 : index
    %c3 = arith.constant 3 : index
    %15 = vector.load %arg1[%c0_13, %c0_14, %c3] : memref<1x4x20xf32, #tpu.memory_space<vmem>>, vector<1x4x17xf32>
    %16 = vector.shape_cast %15 : vector<1x4x17xf32> to vector<4x17xf32>
    %cst_15 = arith.constant dense<0.000000e+00> : vector<18x17xf32>
    %17 = tpu.matmul %14, %16, %cst_15 {dimension_numbers = #tpu.dot_dimension_numbers<[1], [0], [0], [1], [0, 0, 1, 1], [], []>} : vector<18x4xf32>, vector<4x17xf32>, vector<18x17xf32> -> vector<18x17xf32>
    %18 = arith.addf %13, %17 : vector<18x17xf32>
    %c0_16 = arith.constant 0 : index
    %c0_17 = arith.constant 0 : index
    %c0_18 = arith.constant 0 : index
    %19 = vector.load %arg3[%c0_16, %c0_17, %c0_18] : memref<1x18x17xf32, #tpu.memory_space<vmem>>, vector<1x18x17xf32>
    %20 = vector.shape_cast %19 : vector<1x18x17xf32> to vector<18x17xf32>
    %21 = vector.shape_cast %18 : vector<18x17xf32> to vector<1x18x17xf32>
    tpu.vector_store %arg3[%c0_16, %c0_17, %c0_18], %21 {strides = array<i32>} : memref<1x18x17xf32, #tpu.memory_space<vmem>>, vector<1x18x17xf32>,
    return
  }
  func.func @transform_0(%arg0: i32) -> (i32, i32, i32) {
    %c0_i32 = arith.constant 0 : i32
    %c0_i32_0 = arith.constant 0 : i32
    %c0_i32_1 = arith.constant 0 : i32
    return %arg0, %c0_i32, %c0_i32_0 : i32, i32, i32
  }
  func.func @transform_1(%arg0: i32) -> (i32, i32) {
    %c0_i32 = arith.constant 0 : i32
    %c0_i32_0 = arith.constant 0 : i32
    %c0_i32_1 = arith.constant 0 : i32
    return %c0_i32, %c0_i32_0 : i32, i32
  }
  func.func @transform_2(%arg0: i32) -> (i32, i32, i32) {
    %c0_i32 = arith.constant 0 : i32
    %c0_i32_0 = arith.constant 0 : i32
    %c0_i32_1 = arith.constant 0 : i32
    return %arg0, %c0_i32, %c0_i32_0 : i32, i32, i32
  }
}

</mosaic_0001>

<bundles_post_ra>
// kernel: tpu_custom_call.1
= control target key start
LH: loop header
LB: loop body
LE: loop exit
PB: predicated region body
PF: predicated region fallthrough
CT: control target
= control target key end

     0   :  { %s726_s9 = smov 0   ;;  %s800_s0 = inlined_call_operand.vmem [shape: f32[2,4,20], index: 0, kind: input, shape index: {}]   ;;  %s801_s1 = inlined_call_operand.vmem [shape: f32[18,16], index: 1, kind: input, shape index: {}]   ;;  %s802_s2 = inlined_call_operand.vmem [shape: f32[2,18,17], index: 2, kind: output, shape index: {}]  }
   0x1 LB: > { %s593_s10 = sadd.s32 4294967295, %s701_s9   ;;  %p597_p0 = scmp.ge.s32.totalorder %s701_s9, 1  ;;  %s701_s9 = sphi %s726_s9, %s12_s9  }
   0x2   : > { %p111_p1 = scmp.lt.s32.totalorder %s701_s9, 3 }
   0x4   : > { %p112_p2 = pnand %p597_p0, %p111_p1 }
   0x5   : > { %p132_p3 = scmp.lt.s32.totalorder (!%p112_p2), %s593_s10, 1  ;;  %s703_s13 = smov (!%p112_p2), 124  }
   0x6   : > { %115 = sbr.rel (%p112_p2) target bundleno = 352 (0x160), region = 28  ;;  %s706_s20 = smov (!%p112_p2), 127  }
   0x7   : > { %s707_s23 = smov (!%p112_p2), 120   ;;  %s708_s24 = smov (!%p112_p2), 116  }
   0x8   : > { %s709_s25 = smov (!%p112_p2), 126   ;;  %s710_s26 = smov (!%p112_p2), 125  }
   0xb   : > { %v142_v0 = vld [vmem:[%s801_s1 + $0x8] sm:$0xff]  ;;  %s804_s10 = smov (!%p132_p3, %s593_s10), 1  ;;  %v704_v1 = vmov 0.0   ;;  %v143_v2 = vld [vmem:[%s801_s1 + $0x10] sm:$0x3]  ;;  %vm705_vm0 = vmmov 0  }
   0xc   : > { %150 = vrot.lane.b32.xlu1 %v142_v0, %s703_s13  ;;  %634 = vmatprep.subr.mxu0 %v704_v1  ;;  %s598_s16 = sshll.u32 %s804_s10, 2  ;;  %vm157_vm1 = vcmask 31744   ;;  %vm164_vm2 = vcmask 1043456   ;;  %v141_v4 = vld [vmem:[%s801_s1] sm:$0xff]  ;;  %s678_s27 = smul.u32 24, %s804_s10  ;;  %vm533_vm3 = vcmask 138240  }
   0xd   : > { %645 = vmatprep.subr.mxu1 %v704_v1  ;;  %636 = vmatprep.mubr.msk.f32.mxu0 %vm705_vm0, %v704_v1  ;;  %s135_s19 = scalar_lea.vmem %s800_s0, %s598_s16  ;;  %vm536_vm4 = vcmask 132096  }
   0xe   : > { %647 = vmatprep.mubr.msk.f32.mxu1 %vm705_vm0, %v704_v1  ;;  %v144_v3 = vld [vmem:[%s135_s19] sm:$0xf]  ;;  %s140_s30 = scalar_lea.vmem %s802_s2, %s678_s27 }
   0xf   : > { %155 = vrot.lane.b32.xlu0 %v144_v3, %s706_s20  ;;  %646 = vmatpush3.msk.msra.mxu1 %vm164_vm2, %v144_v3 }
  0x10   : > { %152 = vrot.lane.b32.xlu1 %v143_v2, %s703_s13  ;;  %648 = vmatmul.mubr.msk.f32.vlgmr.msra.gmra.mxu1 %vm157_vm1, %v141_v4 }
  0x11   : > { %667 = vmatprep.subr.mxu1 %v704_v1  ;;  %650 = vmatprep.mubr.msk.f32.mxu1 %vm705_vm0, %v704_v1 }
  0x13   : > { %148 = vrot.lane.b32.xlu0 %v141_v4, %s703_s13 }
  0x14   : > { %335 = vrot.lane.b32.xlu1 %v141_v4, %s707_s23  ;;  %651 = vmatmul.mubr.msk.f32.gmra.mxu1 %vm157_vm1, %v142_v0 }
  0x15   : > { %653 = vmatprep.mubr.msk.f32.mxu1 %vm705_vm0, %v704_v1 }
  0x17   : > { %341 = vrot.lane.b32.xlu0 %v144_v3, %s709_s25 }
  0x18   : > { %434 = vrot.lane.b32.xlu1 %v141_v4, %s708_s24  ;;  %654 = vmatmul.mubr.msk.f32.gmra.mxu1 %vm157_vm1, %v143_v2 }
  0x19   : > { %669 = vmatprep.mubr.msk.f32.mxu1 %vm705_vm0, %v704_v1 }
  0x1b   : > { %440 = vrot.lane.b32.xlu0 %v144_v3, %s710_s26 }
  0x1c   : > { %436 = vrot.lane.b32.xlu1 %v142_v0, %s708_s24 }
  0x1f   : > { %337 = vrot.lane.b32.xlu0 %v142_v0, %s707_s23 }
  0x20   : > { %438 = vrot.lane.b32.xlu1 %v143_v2, %s708_s24 }
  0x23   : > { %339 = vrot.lane.b32.xlu0 %v143_v2, %s707_s23 }
  0x7e   : > { %v151_v5 = vpop.permute.xlu1 %150 }
  0x81   : > { %v156_v7 = vpop.permute.xlu0 %155 }
  0x82   : > { %v153_v6 = vpop.permute.xlu1 %152  ;;  %635 = vmatpush3.msk.msra.mxu0 %vm164_vm2, %v156_v7 }
  0x83   : > { %656 = vmatprep.subr.mxu0 %v704_v1 }
  0x85   : > { %v149_v9 = vpop.permute.xlu0 %148 }
  0x86   : > { %v336_v8 = vpop.permute.xlu1 %335  ;;  %637 = vmatmul.mubr.msk.f32.vlgmr.msra.gmra.mxu0 %vm157_vm1, %v149_v9 }
  0x87   : > { %639 = vmatprep.mubr.msk.f32.mxu0 %vm705_vm0, %v704_v1 }
  0x89   : > { %v342_v11 = vpop.permute.xlu0 %341 }
  0x8a   : > { %v435_v10 = vpop.permute.xlu1 %434  ;;  %640 = vmatmul.mubr.msk.f32.gmra.mxu0 %vm157_vm1, %v151_v5 }
  0x8b   : > { %657 = vmatpush3.msk.msra.mxu0 %vm164_vm2, %v342_v11  ;;  %642 = vmatprep.mubr.msk.f32.mxu0 %vm705_vm0, %v704_v1 }
  0x8d   : > { %v441_v12 = vpop.permute.xlu0 %440 }
  0x8e   : > { %643 = vmatmul.mubr.msk.f32.gmra.mxu0 %vm157_vm1, %v153_v6  ;;  %668 = vmatpush3.msk.msra.mxu1 %vm164_vm2, %v441_v12  ;;  %v437_v13 = vpop.permute.xlu1 %436 }
  0x8f   : > { %658 = vmatprep.mubr.msk.f32.mxu0 %vm705_vm0, %v704_v1  ;;  %670 = vmatmul.mubr.msk.f32.vlgmr.msra.gmra.mxu1 %vm157_vm1, %v435_v10 }
  0x90   : > { %672 = vmatprep.mubr.msk.f32.mxu1 %vm705_vm0, %v704_v1 }
  0x91   : > { %v338_v14 = vpop.permute.xlu0 %337 }
  0x92   : > { %659 = vmatmul.mubr.msk.f32.vlgmr.msra.gmra.mxu0 %vm157_vm1, %v336_v8  ;;  %v439_v15 = vpop.permute.xlu1 %438 }
  0x93   : > { %661 = vmatprep.mubr.msk.f32.mxu0 %vm705_vm0, %v704_v1  ;;  %673 = vmatmul.mubr.msk.f32.gmra.mxu1 %vm157_vm1, %v437_v13 }
  0x94   : > { %675 = vmatprep.mubr.msk.f32.mxu1 %vm705_vm0, %v704_v1 }
  0x95   : > { %v340_v16 = vpop.permute.xlu0 %339 }
  0x96   : > { %662 = vmatmul.mubr.msk.f32.gmra.mxu0 %vm157_vm1, %v338_v14 }
  0x97   : > { %664 = vmatprep.mubr.msk.f32.mxu0 %vm705_vm0, %v704_v1  ;;  %676 = vmatmul.mubr.msk.f32.gmra.mxu1 %vm157_vm1, %v439_v15 }
  0x9a   : > { %665 = vmatmul.mubr.msk.f32.gmra.mxu0 %vm157_vm1, %v340_v16 }
  0xd0   : > { %v321_v17 = vpop.f32.mrf.mxu1 }
  0xd2   : > { %v649_v18 = vpop.f32.mrf.mxu1 }
  0xd4   : > { %v326_v19 = vpop.f32.mrf.mxu1 }
  0xd6   : > { %v652_v20 = vpop.f32.mrf.mxu1 }
  0xd8   : > { %v331_v21 = vpop.f32.mrf.mxu1 }
  0xda   : > { %v655_v22 = vpop.f32.mrf.mxu1 }
 0x146   : > { %v233_v23 = vpop.f32.mrf.mxu0 }
 0x147   : > { %v322_v30 = vadd.f32 %v321_v17, %v233_v23 }
 0x148   : > { %v638_v24 = vpop.f32.mrf.mxu0 }
 0x14a   : > { %v238_v25 = vpop.f32.mrf.mxu0 }
 0x14b   : > { %v327_v36 = vadd.f32 %v326_v19, %v238_v25 }
 0x14c   : > { %v641_v26 = vpop.f32.mrf.mxu0 }
 0x14e   : > { %v243_v27 = vpop.f32.mrf.mxu0 }
 0x14f   : > { %v516_v28 = vpop.f32.mrf.mxu1  ;;  %v332_v43 = vadd.f32 %v331_v21, %v243_v27 }
 0x150   : > { %v644_v29 = vpop.f32.mrf.mxu0 }
 0x151   : > { %v671_v31 = vpop.f32.mrf.mxu1 }
 0x152   : > { %v417_v32 = vpop.f32.mrf.mxu0 }
 0x153   : > { %v431_v33 = vadd.f32 %v417_v32, %v322_v30  ;;  %v521_v34 = vpop.f32.mrf.mxu1 }
 0x154   : > { %v660_v35 = vpop.f32.mrf.mxu0 }
 0x155   : > { %v530_v37 = vadd.f32 %v516_v28, %v431_v33  ;;  %v674_v38 = vpop.f32.mrf.mxu1 }
 0x156   : > { %v422_v39 = vpop.f32.mrf.mxu0 }
 0x157   : > { %534 = vst.msk [vmem:[%s140_s30] sm:$0xff] %vm533_vm3, %v530_v37  ;;  %v432_v40 = vadd.f32 %v422_v39, %v327_v36  ;;  %v526_v41 = vpop.f32.mrf.mxu1 }
 0x158   : > { %v663_v42 = vpop.f32.mrf.mxu0 }
 0x159   : > { %v531_v44 = vadd.f32 %v521_v34, %v432_v40  ;;  %v677_v45 = vpop.f32.mrf.mxu1 }
 0x15a   : > { %v427_v46 = vpop.f32.mrf.mxu0 }
 0x15b   : > { %535 = vst.msk [vmem:[%s140_s30 + $0x8] sm:$0xff] %vm533_vm3, %v531_v44  ;;  %v433_v47 = vadd.f32 %v427_v46, %v332_v43 }
 0x15c   : > { %v666_v48 = vpop.f32.mrf.mxu0 }
 0x15d   : > { %v532_v49 = vadd.f32 %v526_v41, %v433_v47 }
 0x15f   : > { %537 = vst.msk [vmem:[%s140_s30 + $0x10] sm:$0x3] %vm536_vm4, %v532_v49 }
 0x160 PF: > { %s12_s9 = sadd.s32 1, %s701_s9  }
 0x161   : > { %p9_p4 = scmp.ge.s32.totalorder %s12_s9, 4  }
 0x163   :  { %11 = sbr.rel (!%p9_p4) target bundleno = 1 (0x1), region = 58 }

</bundles_post_ra>
